<compile_context>
chip_gen: v7x
topology: tpu7x:2x2x1
jax: 0.10.0
libtpu: 0.0.40
codegen_flags: <defaults>
</compile_context>

<pallas_src>
import functools
import math

import jax
import jax.numpy as jnp
from jax.experimental import pallas as pl
from jax.experimental.pallas import tpu as pltpu


def _round_up(x, m):
    return ((x + m - 1) // m) * m


def _cdiv(a, b):
    return -(-a // b)


def _classifier_kernel(x_ref, w_ref, b_ref, out_ref, *, nk, tk):
    # x_ref  : (TB, TK)     f32  -- batch tile of backbone features (cast to bf16 here)
    # w_ref  : (K_pad, NP)  bf16 -- FULL pre-sliced/pre-transposed weight, VMEM-resident
    # b_ref  : (1, NP)      f32  -- pre-sliced bias, lane-padded
    # out_ref: (TB, NP)     f32  -- lane-dense output tile; doubles as the K accumulator
    if nk == 1:
        # Single K step: fused matmul + bias, single store, no accumulator traffic.
        w = w_ref[...]
        out_ref[...] = (
            jnp.dot(x_ref[...].astype(w.dtype), w, preferred_element_type=jnp.float32)
            + b_ref[...]
        ).astype(out_ref.dtype)
    else:
        # K-tiled reduction (only for very large feature_dim).  The output block index
        # is constant across k, so out_ref is the VMEM-resident f32 accumulator.  The
        # resident weight is sliced in-kernel -> it is never re-streamed from HBM.
        k = pl.program_id(1)

        @pl.when(k == 0)
        def _():
            out_ref[...] = jnp.broadcast_to(b_ref[...], out_ref.shape).astype(
                out_ref.dtype
            )

        start = pl.multiple_of(k * tk, tk)
        w = w_ref[pl.ds(start, tk), :]
        out_ref[...] += jnp.dot(
            x_ref[...].astype(w.dtype), w, preferred_element_type=jnp.float32
        )


def prepare_classifier_params(weight, bias, num_classes, compute_dtype=jnp.bfloat16):
    """One-time (hoisted) preprocessing of the classifier parameters.

    weight: (2*nc, feature_dim) f32 (PyTorch layout); bias: (2*nc,) f32.
    Only the second half of the rows is kept: forward() uses
    logits.view(B, 2, nc)[:, 1, :] == logits[:, nc:].
    Returns:
      w_t: (feature_dim, NP) compute_dtype, pre-transposed, lane-padded to NP=roundup(nc,128)
      b2d: (1, NP) f32
    """
    two_nc, feature_dim = weight.shape
    assert two_nc == 2 * num_classes
    np_ = _round_up(num_classes, 128)  # lane-dense output columns (128 for typical nc)

    w_half = weight[num_classes:, :]  # (nc, feature_dim) -- only the used half
    b_half = bias[num_classes:]       # (nc,)

    w_t = jnp.zeros((feature_dim, np_), compute_dtype)
    w_t = w_t.at[:, :num_classes].set(w_half.T.astype(compute_dtype))
    b2d = jnp.zeros((1, np_), jnp.float32)
    b2d = b2d.at[:, :num_classes].set(b_half.astype(jnp.float32))
    return w_t, b2d


def _choose_tiles(B, feature_dim, np_, batch_tile, k_tile, vmem_budget_bytes):
    batch_tile = max(8, (batch_tile // 8) * 8)
    b8 = _round_up(max(B, 1), 8)
    # v7x megacore: keep at least two batch tiles whenever B allows, so the "parallel"
    # batch axis can shard across both TensorCores.
    tb = min(batch_tile, b8, max(8, _round_up(_cdiv(B, 2), 8)))

    def footprint(tb_, tk_, kdim_):
        x_bytes = 2 * tb_ * tk_ * 4        # double-buffered f32 x tile
        w_bytes = 2 * kdim_ * np_ * 2      # resident bf16 weight (conservative 2x)
        o_bytes = 2 * tb_ * np_ * 4        # double-buffered f32 out tile
        return x_bytes + w_bytes + o_bytes + 2 * np_ * 4

    # Prefer a single K step (weight streamed once, zero K padding, no accumulator
    # revisits).  Shrink the batch tile first; only tile K if it still does not fit.
    tk, nk = feature_dim, 1
    while footprint(tb, tk, feature_dim) > vmem_budget_bytes and tb > 8:
        tb = max(8, _round_up(tb // 2, 8))
    if footprint(tb, tk, feature_dim) > vmem_budget_bytes:
        tk = min(_round_up(feature_dim, 128), _round_up(max(k_tile, 128), 128))
        nk = _cdiv(feature_dim, tk)
        while footprint(tb, tk, nk * tk) > vmem_budget_bytes and tk > 128:
            tk = max(128, _round_up(tk // 2, 128))
            nk = _cdiv(feature_dim, tk)
    return tb, tk, nk


def muti_classifier_forward(
    x,
    w_t,
    b2d,
    num_classes,
    *,
    batch_tile=1024,             # auto-shrunk to fit the VMEM budget
    k_tile=2048,                 # only used if K must be tiled (huge feature_dim)
    vmem_limit_bytes=48 << 20,   # v7x-safe (64 MiB physical); raise on v5e/v6e
    force_pallas=False,
):
    """x: (B, feature_dim) f32 backbone features; w_t/b2d from prepare_classifier_params()."""
    B, feature_dim = x.shape
    fd_w, np_ = w_t.shape
    assert fd_w == feature_dim
    assert b2d.shape == (1, np_)

    # Tiny problems (single grid step's worth of work): pallas_call fixed overhead
    # dominates -- let XLA handle it with the same bf16/f32 numerics.
    if not force_pallas and B * feature_dim < (1 << 18):
        out = (
            jnp.dot(x.astype(w_t.dtype), w_t, preferred_element_type=jnp.float32) + b2d
        )
        return out[:, :num_classes]

    vmem_budget = int(vmem_limit_bytes * 0.75)  # leave compiler headroom
    tb, tk, nk = _choose_tiles(B, feature_dim, np_, batch_tile, k_tile, vmem_budget)

    # Batch edge: cheap batch-only pad (f32, no dtype-conversion pass over x).
    b_pad = _round_up(B, tb)
    x_in = x if b_pad == B else jnp.pad(x, ((0, b_pad - B), (0, 0)))

    # K edge only exists when K is tiled (rare: very large feature_dim).  Both x and the
    # weight are zero-padded so no garbage enters the accumulator.
    k_pad = tk * nk
    w_in = w_t
    if k_pad != feature_dim:
        x_in = jnp.pad(x_in, ((0, 0), (0, k_pad - feature_dim)))
        w_in = jnp.pad(w_t, ((0, k_pad - feature_dim), (0, 0)))

    grid = (b_pad // tb, nk)
    kernel = functools.partial(_classifier_kernel, nk=nk, tk=tk)

    out_padded = pl.pallas_call(
        kernel,
        out_shape=jax.ShapeDtypeStruct((b_pad, np_), jnp.float32),
        grid_spec=pltpu.PrefetchScalarGridSpec(
            num_scalar_prefetch=0,
            grid=grid,
            in_specs=[
                pl.BlockSpec((tb, tk), lambda i, k: (i, k)),      # x tile (f32)
                pl.BlockSpec((k_pad, np_), lambda i, k: (0, 0)),  # weight: resident, 1 DMA
                pl.BlockSpec((1, np_), lambda i, k: (0, 0)),      # bias: resident
            ],
            out_specs=pl.BlockSpec((tb, np_), lambda i, k: (i, 0)),
        ),
        compiler_params=pltpu.CompilerParams(
            dimension_semantics=("parallel", "arbitrary"),
            vmem_limit_bytes=vmem_limit_bytes,
        ),
    )(x_in, w_in, b2d)

    # Trim batch padding and lane padding (cheap XLA slices outside the kernel).
    return out_padded[:B, :num_classes]


def init_params(key, feature_dim, num_classes):
    # nn.init.xavier_uniform_(weight, gain=0.1); nn.init.constant_(bias, 0.0)
    out_features = 2 * num_classes
    fan_in, fan_out = feature_dim, out_features
    bound = 0.1 * math.sqrt(6.0 / (fan_in + fan_out))
    weight = jax.random.uniform(
        key, (out_features, feature_dim), jnp.float32, minval=-bound, maxval=bound
    )
    bias = jnp.zeros((out_features,), jnp.float32)
    return weight, bias


if __name__ == "__main__":
    B = 8
    feature_dim = 128
    num_classes = 8

    key = jax.random.PRNGKey(0)
    kx, kw = jax.random.split(key)
    x = jax.random.normal(kx, (B, feature_dim), jnp.float32)  # backbone features
    weight, bias = init_params(kw, feature_dim, num_classes)

    # Hoisted one-time preprocessing: slice to second half, transpose, lane-pad, bf16.
    w_t, b2d = prepare_classifier_params(weight, bias, num_classes)

    # force_pallas=True so the Pallas kernel itself is exercised even at this tiny size.
    out = muti_classifier_forward(x, w_t, b2d, num_classes, force_pallas=True)
    out = jax.block_until_ready(out)
    assert out.shape == (B, num_classes)

    # Reference 1 (tight): same bf16-quantized operands, f32 accumulation.
    x_q = x.astype(jnp.bfloat16).astype(jnp.float32)
    w_q = weight[num_classes:].astype(jnp.bfloat16).astype(jnp.float32)
    ref_q = x_q @ w_q.T + bias[num_classes:]
    assert jnp.allclose(out, ref_q, atol=1e-4, rtol=1e-4)

    # Reference 2 (PyTorch f32 semantics): bf16 quantization is the only deviation,
    # negligible for a linear classifier head.
    ref_logits = x @ weight.T + bias
    ref = ref_logits.reshape(B, 2, num_classes)[:, 1, :]
    assert jnp.allclose(out, ref, atol=3e-2, rtol=3e-2)

    print("KERNEL_OK")
</pallas_src>

<mosaic_0001>
module attributes {stable_mosaic.version = 11 : i64} {
  func.func @_classifier_kernel(%arg0: i32, %arg1: i32, %arg2: memref<8x128xf32, #tpu.memory_space<vmem>>, %arg3: memref<128x128xbf16, #tpu.memory_space<vmem>>, %arg4: memref<1x128xf32, #tpu.memory_space<vmem>>, %arg5: memref<8x128xf32, #tpu.memory_space<vmem>>) attributes {dimension_semantics = [#tpu.dimension_semantics<parallel>, #tpu.dimension_semantics<arbitrary>], iteration_bounds = array<i64: 1, 1>, scalar_prefetch = 0 : i64, scratch_operands = 0 : i64, tpu.core_type = #tpu.core_type<tc>, window_params = [{transform_indices = @transform_0, window_bounds = array<i64: 8, 128>}, {pipeline_mode = #tpu.pipeline_mode<synchronous>, transform_indices = @transform_1, window_bounds = array<i64: 128, 128>}, {pipeline_mode = #tpu.pipeline_mode<synchronous>, transform_indices = @transform_2, window_bounds = array<i64: 1, 128>}, {transform_indices = @transform_3, window_bounds = array<i64: 8, 128>}]} {
    %c0 = arith.constant 0 : index
    %c0_0 = arith.constant 0 : index
    %0 = vector.load %arg3[%c0, %c0_0] : memref<128x128xbf16, #tpu.memory_space<vmem>>, vector<128x128xbf16>
    %c0_1 = arith.constant 0 : index
    %c0_2 = arith.constant 0 : index
    %1 = vector.load %arg2[%c0_1, %c0_2] : memref<8x128xf32, #tpu.memory_space<vmem>>, vector<8x128xf32>
    %2 = arith.truncf %1 : vector<8x128xf32> to vector<8x128xbf16>
    %cst = arith.constant dense<0.000000e+00> : vector<8x128xf32>
    %3 = tpu.matmul %2, %0, %cst {dimension_numbers = #tpu.dot_dimension_numbers<[1], [0], [0], [1], [0, 0, 1, 1], [], []>} : vector<8x128xbf16>, vector<128x128xbf16>, vector<8x128xf32> -> vector<8x128xf32>
    %c0_3 = arith.constant 0 : index
    %c0_4 = arith.constant 0 : index
    %4 = vector.load %arg4[%c0_3, %c0_4] : memref<1x128xf32, #tpu.memory_space<vmem>>, vector<1x128xf32>
    %5 = vector.broadcast %4 : vector<1x128xf32> to vector<8x128xf32>
    %6 = arith.addf %3, %5 : vector<8x128xf32>
    %c0_5 = arith.constant 0 : index
    %c0_6 = arith.constant 0 : index
    %7 = vector.load %arg5[%c0_5, %c0_6] : memref<8x128xf32, #tpu.memory_space<vmem>>, vector<8x128xf32>
    tpu.vector_store %arg5[%c0_5, %c0_6], %6 {strides = array<i32>} : memref<8x128xf32, #tpu.memory_space<vmem>>, vector<8x128xf32>,
    return
  }
  func.func @transform_0(%arg0: i32, %arg1: i32) -> (i32, i32) {
    %c0_i32 = arith.constant 0 : i32
    return %arg0, %arg1 : i32, i32
  }
  func.func @transform_1(%arg0: i32, %arg1: i32) -> (i32, i32) {
    %c0_i32 = arith.constant 0 : i32
    %c0_i32_0 = arith.constant 0 : i32
    %c0_i32_1 = arith.constant 0 : i32
    return %c0_i32, %c0_i32_0 : i32, i32
  }
  func.func @transform_2(%arg0: i32, %arg1: i32) -> (i32, i32) {
    %c0_i32 = arith.constant 0 : i32
    %c0_i32_0 = arith.constant 0 : i32
    %c0_i32_1 = arith.constant 0 : i32
    return %c0_i32, %c0_i32_0 : i32, i32
  }
  func.func @transform_3(%arg0: i32, %arg1: i32) -> (i32, i32) {
    %c0_i32 = arith.constant 0 : i32
    %c0_i32_0 = arith.constant 0 : i32
    return %arg0, %c0_i32 : i32, i32
  }
}

</mosaic_0001>

<bundles_post_ra>
// kernel: tpu_custom_call.1
= control target key start
LH: loop header
LB: loop body
LE: loop exit
PB: predicated region body
PF: predicated region fallthrough
CT: control target
= control target key end

     0   :  { %8 = vsyncpa [#allocation3], 0  ;;  %s370_s0 = inlined_call_operand.hbm [shape: f32[8,128], index: 0, kind: input, shape index: {}]   ;;  %s371_s1 = inlined_call_operand.hbm [shape: bf16[128,128], index: 1, kind: input, shape index: {}]   ;;  %s372_s2 = inlined_call_operand.vmem [shape: f32[1,128], index: 2, kind: input, shape index: {}]   ;;  %s373_s3 = inlined_call_operand.hbm [shape: f32[8,128], index: 3, kind: output, shape index: {}]  }
   0x1   :  { %9 = vsyncpa [#allocation6], 0 }
   0x2   :  { %10 = vsyncpa [#allocation4], 0  ;;  %s297_s12 = smov [#allocation2]   ;;  %s298_s14 = smov [#allocation5]  }
   0x3   :  { %s17_s13 = sshll.u32 %s297_s12, 4  ;;  %s26_s15 = sshll.u32 %s298_s14, 4  ;;  %s18_s13 = int_to_ptr.vmem [resolvable:$true] %s17_s13  ;;  %s324_s15 = int_to_ptr.vmem [resolvable:$true] %s26_s15 }
   0x4   :  { %s225_s18 = scalar_lea.hbm %s370_s0, 128 }
   0x5   :  { %p226_p0 = scmp.ne.s32.totalorder %s370_s0, %s225_s18  ;;  %p229_p1 = scmp.lt.u32.totalorder %s225_s18, %s370_s0 }
   0x7   :  { %p231_p2 = pnand %p229_p1, %p226_p0 }
   0x9   :  { %234 = shalt.err (!%p231_p2)
}
   0xa   :  { %s235_s23 = scalar_lea.vmem %s18_s13, 128  ;;  %p240_p4 = scmp.lt.s32.totalorder %s18_s13, %s18_s13 }
   0xb   :  { %p236_p3 = scmp.ne.s32.totalorder %s18_s13, %s235_s23  ;;  %p241_p5 = scmp.lt.s32.totalorder %s235_s23, %s235_s23 }
   0xd   :  { %p242_p6 = por %p241_p5, %p240_p4 }
   0xf   :  { %p243_p7 = pnand %p242_p6, %p236_p3 }
  0x11   :  { %246 = shalt.err (!%p243_p7)
}
  0x12   :  { %20 = dma.hbm_to_vmem [thread:$0]  %s370_s0, 128, %s18_s13, [#allocation3]  }
  0x13   :  { %s247_s28 = scalar_lea.hbm %s371_s1, 1024 }
  0x14   :  { %p248_p8 = scmp.ne.s32.totalorder %s371_s1, %s247_s28  ;;  %p251_p9 = scmp.lt.u32.totalorder %s247_s28, %s371_s1 }
  0x16   :  { %p253_p10 = pnand %p251_p9, %p248_p8 }
  0x18   :  { %256 = shalt.err (!%p253_p10)
}
  0x19   :  { %s257_s6 = scalar_lea.vmem %s324_s15, 1024  ;;  %p262_p12 = scmp.lt.s32.totalorder %s324_s15, %s324_s15 }
  0x1a   :  { %p258_p11 = scmp.ne.s32.totalorder %s324_s15, %s257_s6  ;;  %p263_p13 = scmp.lt.s32.totalorder %s257_s6, %s257_s6 }
  0x1c   :  { %p264_p0 = por %p263_p13, %p262_p12 }
  0x1e   :  { %p265_p1 = pnand %p264_p0, %p258_p11 }
  0x20   :  { %268 = shalt.err (!%p265_p1)
}
  0x21   :  { %s299_s0 = smov 64   ;;  %s300_s7 = smov 4  }
  0x22   :  { %32 = dma.hbm_to_vmem [thread:$0]  %s371_s1, 1024, %s324_s15, [#allocation6], %s299_s0, %s299_s0, %s300_s7  }
  0x23   :  { %291 = dma.done.wait [#allocation3], 128  }
  0x24   :  { %292 = vsyncadd [#allocation3], 4294967168 }
  0x25   :  { %293 = dma.done.wait [#allocation6], 1024  }
  0x26   :  { %294 = vsyncadd [#allocation6], 4294966272  ;;  %v301_v0 = vmov 0.0   ;;  %vm302_vm0 = vmmov 0   ;;  %v217_v1 = vld [vmem:[#allocation5] sm:$0xff]   ;;  %v218_v2 = vld [vmem:[#allocation5 + $0x8] sm:$0xff]  }
  0x27   :  { %190 = vmatprep.subr.bf16.mxu0 %v301_v0  ;;  %206 = vmatprep.mubr.msk.bf16.mxu0 %vm302_vm0, %v301_v0  ;;  %v219_v3 = vld [vmem:[#allocation5 + $0x10] sm:$0xff]   ;;  %v220_v4 = vld [vmem:[#allocation5 + $0x18] sm:$0xff]   ;;  %v221_v5 = vld [vmem:[#allocation5 + $0x20] sm:$0xff]   ;;  %s303_s11 = smov [#allocation7]  }
  0x28   :  { %191 = vmatpush3.bf16.msra.mxu0 %v217_v1  ;;  %v222_v6 = vld [vmem:[#allocation5 + $0x28] sm:$0xff]   ;;  %v223_v7 = vld [vmem:[#allocation5 + $0x30] sm:$0xff]   ;;  %v224_v8 = vld [vmem:[#allocation5 + $0x38] sm:$0xff]   ;;  %s162_s12 = sshll.u32 %s303_s11, 4  ;;  %s163_s12 = int_to_ptr.vmem [resolvable:$true] %s162_s12 }
  0x29   :  { %192 = vmatprep.subr.bf16.mxu0 %v301_v0  ;;  %v58_v9 = vld [vmem:[#allocation2] sm:$0xff]  ;;  %s269_s13 = scalar_lea.vmem %s163_s12, 128  ;;  %p274_p3 = scmp.lt.s32.totalorder %s163_s12, %s163_s12 }
  0x2a   :  { %v59_v10 = vpack.c.bf16 %v58_v9, %v58_v9  ;;  %v172_v11 = vld [vmem:[%s372_s2] ss:$0 sm:$0xff]  ;;  %p270_p2 = scmp.ne.s32.totalorder %s163_s12, %s269_s13  ;;  %p275_p4 = scmp.lt.s32.totalorder %s269_s13, %s269_s13 }
  0x2c   :  { %193 = vmatpush3.bf16.msra.mxu0 %v218_v2  ;;  %p276_p5 = por %p275_p4, %p274_p3 }
  0x2d   :  { %194 = vmatprep.subr.bf16.mxu0 %v301_v0 }
  0x2e   :  { %p277_p6 = pnand %p276_p5, %p270_p2 }
  0x30   :  { %195 = vmatpush3.bf16.msra.mxu0 %v219_v3 }
  0x31   :  { %196 = vmatprep.subr.bf16.mxu0 %v301_v0 }
  0x34   :  { %197 = vmatpush3.bf16.msra.mxu0 %v220_v4 }
  0x35   :  { %198 = vmatprep.subr.bf16.mxu0 %v301_v0 }
  0x38   :  { %199 = vmatpush3.bf16.msra.mxu0 %v221_v5 }
  0x39   :  { %200 = vmatprep.subr.bf16.mxu0 %v301_v0 }
  0x3c   :  { %201 = vmatpush3.bf16.msra.mxu0 %v222_v6 }
  0x3d   :  { %202 = vmatprep.subr.bf16.mxu0 %v301_v0 }
  0x40   :  { %203 = vmatpush3.bf16.msra.mxu0 %v223_v7 }
  0x41   :  { %204 = vmatprep.subr.bf16.mxu0 %v301_v0 }
  0x44   :  { %205 = vmatpush3.bf16.msra.mxu0 %v224_v8 }
  0x47   :  { %207 = vmatmul.mubr.bf16.vlgmr.msra.gmra.mrb[0].mxu0 %v59_v10 }
 0x11a   :  { %v149_v12 = vpop.f32.mrb[0].mxu0 }
 0x11b   :  { %v150_v13 = vadd.f32 %v172_v11, %v149_v12  ;;  %v208_v14 = vpop.f32.mrb[1].mxu0 }
 0x11c   :  { %v152_v15 = vpop.f32.mrb[2].mxu0 }
 0x11d   :  { %155 = vst [vmem:[#allocation7] sm:$0xff] %v150_v13  ;;  %v209_v16 = vpop.f32.mrb[3].mxu0 }
 0x11e   :  { %280 = shalt.err (!%p277_p6)
}
 0x11f   :  { %s281_s2 = scalar_lea.hbm %s373_s3, 128 }
 0x120   :  { %p282_p7 = scmp.ne.s32.totalorder %s373_s3, %s281_s2  ;;  %p285_p8 = scmp.lt.u32.totalorder %s281_s2, %s373_s3 }
 0x122   :  { %p287_p9 = pnand %p285_p8, %p282_p7 }
 0x124   :  { %290 = shalt.err (!%p287_p9)
}
 0x125   :  { %165 = dma.vmem_to_hbm [thread:$0]  %s163_s12, 128, %s373_s3, [#allocation4]  }
 0x126   :  { %295 = dma.done.wait [#allocation4], 128  }
 0x127   :  { %296 = vsyncadd [#allocation4], 4294967168 }
 0x128   :  { %169 = vsyncpa [#allocation3], 1 }
 0x129   :  { %170 = vsyncpa [#allocation6], 1 }
 0x12a   :  { %171 = vsyncpa [#allocation4], 1 }

</bundles_post_ra>
